<compile_context>
chip_gen: v7x
topology: tpu7x:2x2x1
jax: 0.10.0
libtpu: 0.0.40
codegen_flags: <defaults>
</compile_context>

<pallas_src>
import functools

import jax
import jax.numpy as jnp
from jax.experimental import pallas as pl
from jax.experimental.pallas import tpu as pltpu

_LANE = 128
_SUB = 8
_MAX_BLOCK_ROWS = 1024  # 1024x128 f32 = 512 KiB per input per buffer


def _round_up(x, m):
    return ((x + m - 1) // m) * m


def _wbce_kernel(yp_ref, yt_ref, out_ref, *, block_rows, n_elems):
    i = pl.program_id(0)

    p = yp_ref[...].astype(jnp.float32)
    y = yt_ref[...].astype(jnp.float32)

    one_m_p = 1.0 - p
    # Two logs per element (labels are not assumed to be hard {0,1}).
    log_p = jnp.log(jnp.clip(p, 1e-15, 1.0))
    log_1mp = jnp.log(jnp.clip(one_m_p, 1e-15, 1.0))
    term = (one_m_p * one_m_p) * y * log_p + (p * p) * (1.0 - y) * log_1mp

    # Mask padded / out-of-bounds tail elements (only the last block has any).
    row = jax.lax.broadcasted_iota(jnp.int32, term.shape, 0)
    lane = jax.lax.broadcasted_iota(jnp.int32, term.shape, 1)
    elem = (i * block_rows + row) * _LANE + lane
    term = jnp.where(elem < n_elems, term, 0.0)

    # Per-lane partial sums: vreg-by-vreg adds into one (8, 128) slab,
    # written to this block's private output slot (no loop-carried state).
    partial = jnp.sum(term.reshape(-1, _SUB, _LANE), axis=0)
    out_ref[...] = partial.reshape(1, _SUB, _LANE)


@jax.jit
def wbce_loss(ypred, ytrue):
    # Glue (squeeze / reshape) in plain JAX; reshape of contiguous data is free.
    yp = jnp.squeeze(ypred, axis=1)  # (N, H, W)
    n_elems = yp.size

    yp_flat = yp.reshape(-1)               # native dtype, no HBM upcast
    yt_flat = ytrue.reshape(-1)

    # Pad only when needed (< 128 elements); padded values are masked in-kernel.
    pad = (-n_elems) % _LANE
    if pad:
        yp_flat = jnp.pad(yp_flat, (0, pad), constant_values=1)
        yt_flat = jnp.pad(yt_flat, (0, pad), constant_values=1)
    rows = (n_elems + pad) // _LANE

    yp2 = yp_flat.reshape(rows, _LANE)
    yt2 = yt_flat.reshape(rows, _LANE)

    block_rows = min(_MAX_BLOCK_ROWS, _round_up(rows, _SUB))
    num_blocks = pl.cdiv(rows, block_rows)

    kernel = functools.partial(
        _wbce_kernel, block_rows=block_rows, n_elems=n_elems)

    partials = pl.pallas_call(
        kernel,
        out_shape=jax.ShapeDtypeStruct((num_blocks, _SUB, _LANE), jnp.float32),
        grid=(num_blocks,),
        in_specs=[
            pl.BlockSpec((block_rows, _LANE), lambda i: (i, 0)),
            pl.BlockSpec((block_rows, _LANE), lambda i: (i, 0)),
        ],
        out_specs=pl.BlockSpec((1, _SUB, _LANE), lambda i: (i, 0, 0)),
        compiler_params=pltpu.CompilerParams(
            dimension_semantics=("parallel",)),
    )(yp2, yt2)

    # Tiny final reduction (num_blocks * 4 KiB) done in JAX.
    return -jnp.sum(partials) / jnp.float32(n_elems)


def _wbce_ref(ypred, ytrue):
    p = jnp.squeeze(ypred, axis=1).astype(jnp.float32)
    y = ytrue.astype(jnp.float32)
    t = ((1.0 - p) ** 2 * y * jnp.log(jnp.clip(p, 1e-15, 1.0))
         + p ** 2 * (1.0 - y) * jnp.log(jnp.clip(1.0 - p, 1e-15, 1.0)))
    return -jnp.mean(t)


if __name__ == "__main__":
    key = jax.random.PRNGKey(0)

    # Shapes: main case + a non-128-divisible case (exercises pad+mask path)
    # + a multi-row case.
    shapes = [
        (2, 1, 16, 16),
        (2, 1, 20, 25),
        (2, 1, 64, 64),
    ]
    for idx, (N, C, H, W) in enumerate(shapes):
        k1, k2 = jax.random.split(jax.random.fold_in(key, idx))
        ypred = jax.nn.sigmoid(jax.random.normal(k1, (N, C, H, W), jnp.float32))
        ytrue = jax.random.bernoulli(k2, 0.5, (N, H, W)).astype(jnp.float32)

        out = jax.block_until_ready(wbce_loss(ypred, ytrue))
        ref = _wbce_ref(ypred, ytrue)
        assert jnp.allclose(out, ref, rtol=1e-5, atol=1e-6), (out, ref)

    print("KERNEL_OK")
</pallas_src>

<mosaic_0001>
module attributes {stable_mosaic.version = 11 : i64} {
  func.func @_wbce_kernel(%arg0: i32, %arg1: memref<8x128xf32, #tpu.memory_space<vmem>>, %arg2: memref<8x128xf32, #tpu.memory_space<vmem>>, %arg3: memref<1x8x128xf32, #tpu.memory_space<vmem>>) attributes {dimension_semantics = [#tpu.dimension_semantics<parallel>], iteration_bounds = array<i64: 1>, scalar_prefetch = 0 : i64, scratch_operands = 0 : i64, tpu.core_type = #tpu.core_type<tc>, window_params = [{transform_indices = @transform_0, window_bounds = array<i64: 8, 128>}, {transform_indices = @transform_1, window_bounds = array<i64: 8, 128>}, {transform_indices = @transform_2, window_bounds = array<i64: 1, 8, 128>}]} {
    %c0 = arith.constant 0 : index
    %c0_0 = arith.constant 0 : index
    %0 = vector.load %arg1[%c0, %c0_0] : memref<8x128xf32, #tpu.memory_space<vmem>>, vector<8x128xf32>
    %c0_1 = arith.constant 0 : index
    %c0_2 = arith.constant 0 : index
    %1 = vector.load %arg2[%c0_1, %c0_2] : memref<8x128xf32, #tpu.memory_space<vmem>>, vector<8x128xf32>
    %cst = arith.constant 1.000000e+00 : f32
    %2 = vector.broadcast %cst : f32 to vector<8x128xf32>
    %3 = arith.subf %2, %0 : vector<8x128xf32>
    %cst_3 = arith.constant 1.000000e-15 : f32
    %cst_4 = arith.constant 1.000000e+00 : f32
    %4 = vector.broadcast %cst_3 : f32 to vector<8x128xf32>
    %5 = arith.maximumf %4, %0 : vector<8x128xf32>
    %6 = vector.broadcast %cst_4 : f32 to vector<8x128xf32>
    %7 = arith.minimumf %6, %5 : vector<8x128xf32>
    %8 = math.log %7 : vector<8x128xf32>
    %cst_5 = arith.constant 1.000000e-15 : f32
    %cst_6 = arith.constant 1.000000e+00 : f32
    %9 = vector.broadcast %cst_5 : f32 to vector<8x128xf32>
    %10 = arith.maximumf %9, %3 : vector<8x128xf32>
    %11 = vector.broadcast %cst_6 : f32 to vector<8x128xf32>
    %12 = arith.minimumf %11, %10 : vector<8x128xf32>
    %13 = math.log %12 : vector<8x128xf32>
    %14 = arith.mulf %3, %3 : vector<8x128xf32>
    %15 = arith.mulf %14, %1 : vector<8x128xf32>
    %16 = arith.mulf %15, %8 : vector<8x128xf32>
    %17 = arith.mulf %0, %0 : vector<8x128xf32>
    %cst_7 = arith.constant 1.000000e+00 : f32
    %18 = vector.broadcast %cst_7 : f32 to vector<8x128xf32>
    %19 = arith.subf %18, %1 : vector<8x128xf32>
    %20 = arith.mulf %17, %19 : vector<8x128xf32>
    %21 = arith.mulf %20, %13 : vector<8x128xf32>
    %22 = arith.addf %16, %21 : vector<8x128xf32>
    %23 = tpu.iota {dimensions = array<i32: 0>} : vector<8x128xi32>
    %24 = tpu.iota {dimensions = array<i32: 1>} : vector<8x128xi32>
    %c8_i32 = arith.constant 8 : i32
    %25 = arith.muli %arg0, %c8_i32 : i32
    %26 = vector.broadcast %25 : i32 to vector<8x128xi32>
    %27 = arith.addi %26, %23 : vector<8x128xi32>
    %c128_i32 = arith.constant 128 : i32
    %28 = vector.broadcast %c128_i32 : i32 to vector<8x128xi32>
    %29 = arith.muli %27, %28 : vector<8x128xi32>
    %30 = arith.addi %29, %24 : vector<8x128xi32>
    %c512_i32 = arith.constant 512 : i32
    %31 = vector.broadcast %c512_i32 : i32 to vector<8x128xi32>
    %32 = arith.cmpi slt, %30, %31 : vector<8x128xi32>
    %cst_8 = arith.constant 0.000000e+00 : f32
    %33 = vector.broadcast %cst_8 : f32 to vector<8x128xf32>
    %34 = arith.select %32, %22, %33 : vector<8x128xi1>, vector<8x128xf32>
    %35 = vector.shape_cast %34 : vector<8x128xf32> to vector<1x8x128xf32>
    %cst_9 = arith.constant dense<0.000000e+00> : vector<8x128xf32>
    %36 = vector.multi_reduction <add>, %35, %cst_9 [0] : vector<1x8x128xf32> to vector<8x128xf32>
    %37 = vector.shape_cast %36 : vector<8x128xf32> to vector<1x8x128xf32>
    %c0_10 = arith.constant 0 : index
    %c0_11 = arith.constant 0 : index
    %c0_12 = arith.constant 0 : index
    %38 = vector.load %arg3[%c0_10, %c0_11, %c0_12] : memref<1x8x128xf32, #tpu.memory_space<vmem>>, vector<1x8x128xf32>
    tpu.vector_store %arg3[%c0_10, %c0_11, %c0_12], %37 {strides = array<i32>} : memref<1x8x128xf32, #tpu.memory_space<vmem>>, vector<1x8x128xf32>,
    return
  }
  func.func @transform_0(%arg0: i32) -> (i32, i32) {
    %c0_i32 = arith.constant 0 : i32
    %c0_i32_0 = arith.constant 0 : i32
    return %arg0, %c0_i32 : i32, i32
  }
  func.func @transform_1(%arg0: i32) -> (i32, i32) {
    %c0_i32 = arith.constant 0 : i32
    %c0_i32_0 = arith.constant 0 : i32
    return %arg0, %c0_i32 : i32, i32
  }
  func.func @transform_2(%arg0: i32) -> (i32, i32, i32) {
    %c0_i32 = arith.constant 0 : i32
    %c0_i32_0 = arith.constant 0 : i32
    %c0_i32_1 = arith.constant 0 : i32
    return %arg0, %c0_i32, %c0_i32_0 : i32, i32, i32
  }
}

</mosaic_0001>

<bundles_post_ra>
// kernel: squeeze.1
= control target key start
LH: loop header
LB: loop body
LE: loop exit
PB: predicated region body
PF: predicated region fallthrough
CT: control target
= control target key end

     0   :  { %2 = vsyncpa [#allocation1], 0  ;;  %s96_s6 = smov [#allocation0]   ;;  %s129_s0 = inlined_call_operand.hbm [shape: f32[2,1,16,16], index: 0, kind: input, shape index: {}]   ;;  %s130_s1 = inlined_call_operand.vmem [shape: f32[4,128], index: 1, kind: output, shape index: {}]  }
   0x1   :  { %s7_s7 = sshll.u32 %s96_s6, 4  ;;  %s72_s10 = scalar_lea.hbm %s129_s0, 512  ;;  %s8_s7 = int_to_ptr.vmem [resolvable:$true] %s7_s7 }
   0x2   :  { %p73_p0 = scmp.ne.s32.totalorder %s129_s0, %s72_s10  ;;  %p76_p1 = scmp.lt.u32.totalorder %s72_s10, %s129_s0 }
   0x4   :  { %p78_p2 = pnand %p76_p1, %p73_p0 }
   0x6   :  { %81 = shalt.err (!%p78_p2)
}
   0x7   :  { %s82_s15 = scalar_lea.vmem %s8_s7, 512  ;;  %p87_p4 = scmp.lt.s32.totalorder %s8_s7, %s8_s7 }
   0x8   :  { %p83_p3 = scmp.ne.s32.totalorder %s8_s7, %s82_s15  ;;  %p88_p5 = scmp.lt.s32.totalorder %s82_s15, %s82_s15 }
   0xa   :  { %p89_p6 = por %p88_p5, %p87_p4 }
   0xc   :  { %p90_p7 = pnand %p89_p6, %p83_p3 }
   0xe   :  { %93 = shalt.err (!%p90_p7)
}
   0xf   :  { %10 = dma.hbm_to_vmem [thread:$0]  %s129_s0, 512, %s8_s7, [#allocation1]  }
  0x10   :  { %94 = dma.done.wait [#allocation1], 512  }
  0x11   :  { %95 = vsyncadd [#allocation1], 4294966784  ;;  %v16_v0 = vld [vmem:[#allocation0 + $0x7] ss:$8 sm:$0xf]   ;;  %s97_s0 = smov 112  }
  0x12   :  { %v28_v1 = vld [vmem:[#allocation0 + $0x5] ss:$8 sm:$0xf]   ;;  %17 = vrot.lane.b32.xlu0 %v16_v0, %s97_s0  ;;  %s98_s18 = smov 80   ;;  %vm13_vm0 = vcmask 130048   ;;  %s99_s19 = smov 96  }
  0x13   :  { %29 = vrot.lane.b32.xlu1 %v28_v1, %s98_s18  ;;  %v22_v2 = vld [vmem:[#allocation0 + $0x6] ss:$8 sm:$0xf]   ;;  %v34_v3 = vld [vmem:[#allocation0 + $0x4] ss:$8 sm:$0xf]  }
  0x14   :  { %v12_v4 = vld [vmem:[#allocation0] ss:$8 sm:$0xf]   ;;  %s100_s20 = smov 64   ;;  %s101_s21 = smov 48   ;;  %vm19_vm1 = vcmask 1048448  }
  0x15   :  { %14 = vst.msk [vmem:[#allocation2] sm:$0xf] %vm13_vm0, %v12_v4   ;;  %v40_v5 = vld [vmem:[#allocation0 + $0x3] ss:$8 sm:$0xf]   ;;  %s102_s22 = smov 32  }
  0x16   :  { %23 = vrot.lane.b32.xlu0 %v22_v2, %s99_s19  ;;  %v46_v6 = vld [vmem:[#allocation0 + $0x2] ss:$8 sm:$0xf]   ;;  %v52_v7 = vld [vmem:[#allocation0 + $0x1] ss:$8 sm:$0xf]  }
  0x17   :  { %35 = vrot.lane.b32.xlu1 %v34_v3, %s100_s20  ;;  %s103_s23 = smov 16   ;;  %vm25_vm2 = vcmask 917248   ;;  %vm31_vm3 = vcmask 786048   ;;  %vm37_vm4 = vcmask 654848   ;;  %vm43_vm5 = vcmask 523648  }
  0x18   :  { %vm49_vm6 = vcmask 392448   ;;  %vm55_vm7 = vcmask 261248  }
  0x1a   :  { %41 = vrot.lane.b32.xlu0 %v40_v5, %s101_s21 }
  0x1b   :  { %47 = vrot.lane.b32.xlu1 %v46_v6, %s102_s22 }
  0x1e   :  { %53 = vrot.lane.b32.xlu0 %v52_v7, %s103_s23 }
  0x84   :  { %v18_v8 = vpop.permute.xlu0 %17  }
  0x85   :  { %v30_v9 = vpop.permute.xlu1 %29   ;;  %20 = vst.msk [vmem:[#allocation2] sm:$0xf] %vm19_vm1, %v18_v8  }
  0x88   :  { %v24_v10 = vpop.permute.xlu0 %23  }
  0x89   :  { %v36_v11 = vpop.permute.xlu1 %35   ;;  %26 = vst.msk [vmem:[#allocation2] sm:$0xf] %vm25_vm2, %v24_v10  }
  0x8a   :  { %32 = vst.msk [vmem:[#allocation2] sm:$0xf] %vm31_vm3, %v30_v9  }
  0x8b   :  { %38 = vst.msk [vmem:[#allocation2] sm:$0xf] %vm37_vm4, %v36_v11  }
  0x8c   :  { %v42_v12 = vpop.permute.xlu0 %41  }
  0x8d   :  { %v48_v13 = vpop.permute.xlu1 %47   ;;  %44 = vst.msk [vmem:[#allocation2] sm:$0xf] %vm43_vm5, %v42_v12  }
  0x8e   :  { %50 = vst.msk [vmem:[#allocation2] sm:$0xf] %vm49_vm6, %v48_v13  }
  0x90   :  { %v54_v14 = vpop.permute.xlu0 %53  }
  0x91   :  { %56 = vst.msk [vmem:[#allocation2] sm:$0xf] %vm55_vm7, %v54_v14  }
  0x98   :  { %v60_v15 = vld [vmem:[#allocation2] sm:$0xf] }
  0x99   :  { %62 = vst [vmem:[%s130_s1] sm:$0xf] %v60_v15 }
  0x9a   :  { %63 = vsyncpa [#allocation1], 1 }

// kernel: wbce_loss.1
= control target key start
LH: loop header
LB: loop body
LE: loop exit
PB: predicated region body
PF: predicated region fallthrough
CT: control target
= control target key end

     0   :  { %v30_v6 = vlaneseq  ;;  %s75_s0 = inlined_call_operand.vmem [shape: f32[4,128], index: 0, kind: input, shape index: {}]   ;;  %s76_s1 = inlined_call_operand.vmem [shape: f32[4,128], index: 1, kind: input, shape index: {}]   ;;  %s77_s2 = inlined_call_operand.vmem [shape: f32[1,8,128], index: 2, kind: output, shape index: {}]  }
   0x1   :  { %v11_v0 = vld [vmem:[%s75_s0] sm:$0xff] }
   0x2   :  { %v13_v1 = vsub.f32 1.0, %v11_v0  ;;  %v14_v2 = vmax.f32 %v11_v0, 1e-15  ;;  %v12_v7 = vld [vmem:[%s76_s1] sm:$0xff]  ;;  %v31_v8 = vshrl.u32 %v30_v6, 7  ;;  %v25_v10 = vmul.f32 %v11_v0, %v11_v0 }
   0x3   :  { %v26_v11 = vsub.f32 1.0, %v12_v7  ;;  %v33_v12 = vand.u32 127, %v30_v6 }
   0x4   :  { %v15_v3 = vmin.f32 %v14_v2, 1.0  ;;  %v18_v4 = vmax.f32 %v13_v1, 1e-15  ;;  %v22_v9 = vmul.f32 %v13_v1, %v13_v1  ;;  %v37_v13 = vmul.u32 128, %v31_v8 }
   0x5   :  { %v27_v17 = vmul.f32 %v26_v11, %v25_v10 }
   0x6   :  { %47 = vlog2.f32 %v15_v3  ;;  %v19_v5 = vmin.f32 %v18_v4, 1.0  ;;  %v23_v14 = vmul.f32 %v22_v9, %v12_v7  ;;  %v38_v19 = vadd.s32 %v37_v13, %v33_v12 }
   0x8   :  { %49 = vlog2.f32 %v19_v5  ;;  %vm39_vm0 = vcmp.lt.s32.totalorder %v38_v19, 512 }
  0x10   :  { %v48_v15 = vpop.eup %47 }
  0x11   :  { %v17_v16 = vmul.f32 0.6931472, %v48_v15 }
  0x12   :  { %v50_v18 = vpop.eup %49 }
  0x13   :  { %v21_v20 = vmul.f32 0.6931472, %v50_v18  ;;  %v24_v21 = vmul.f32 %v23_v14, %v17_v16 }
  0x15   :  { %v28_v22 = vmul.f32 %v27_v17, %v21_v20 }
  0x17   :  { %v29_v23 = vadd.f32 %v28_v22, %v24_v21 }
  0x19   :  { %v40_v24 = vsel %vm39_vm0, %v29_v23, 0.0 }
  0x1a   :  { %42 = vst [vmem:[%s77_s2] sm:$0xff] %v40_v24 }

</bundles_post_ra>
